<compile_context>
chip_gen: v6e
topology: v6e:2x2x1
jax: 0.10.0
libtpu: 0.0.40
codegen_flags: <defaults>
</compile_context>

<pallas_src>
import functools

import jax
import jax.numpy as jnp
from jax.experimental import pallas as pl
from jax.experimental.pallas import tpu as pltpu


def _round_up(v, m):
    return ((v + m - 1) // m) * m


def _pick_bt(batch):
    """Batch-tile size: largest divisor of B that still yields >= 2 grid steps
    (feeds both v7x TensorCores), capped so the tile stays small."""
    if batch <= 1:
        return 1
    cap = min(batch // 2, 8)
    for d in range(cap, 0, -1):
        if batch % d == 0:
            return d
    return 1


def _gcn_kernel(s2_ref, x_ref, w_ref, b_ref, o_ref, *, cheb_k, bt, dim_in, mxu_dtype):
    # s2_ref: (Np, Np)        = 2*support, in mxu_dtype (invariant across grid)
    # x_ref:  (1, Np, bt*C)   batch tile, batch along lanes, in mxu_dtype
    # w_ref:  (cheb_k*C, Op)  in mxu_dtype (invariant)
    # b_ref:  (1, Op)         f32 (invariant)
    # o_ref:  (1, bt*Np, Op)
    f32 = jnp.float32
    s2 = s2_ref[...]                      # already in MXU dtype (no per-step cast)
    w = w_ref[...]
    bias = b_ref[...]                     # (1, Op) f32, broadcasts over rows

    # Chebyshev recursion on the propagated features, batched over lanes.
    # Carries are kept in f32; only MXU operands are in mxu_dtype.
    x0 = x_ref[0].astype(f32)             # (Np, bt*C)
    xs = [x0]
    if cheb_k > 1:
        # s2 = 2*S, so S@x = 0.5 * (s2 @ x); 0.5 scale is exact.
        xs.append(0.5 * jnp.dot(s2, x_ref[0], preferred_element_type=f32))
    for _ in range(2, cheb_k):
        xs.append(jnp.dot(s2, xs[-1].astype(mxu_dtype), preferred_element_type=f32)
                  - xs[-2])

    # One cross-batch relayout: (Np, bt*C) x K  ->  (bt*Np, K*C)
    #   row b*Np + n carries concat_k xs[k][n, b*C:(b+1)*C]
    per_b = []
    for b in range(bt):
        per_b.append(jnp.concatenate(
            [xk[:, b * dim_in:(b + 1) * dim_in] for xk in xs], axis=-1))
    x_g = jnp.concatenate(per_b, axis=0)  # (bt*Np, cheb_k*C) f32

    # Single fused weight matmul + single bias add + single lane-dense store.
    out = jnp.dot(x_g.astype(mxu_dtype), w, preferred_element_type=f32)
    o_ref[0] = (out + bias).astype(o_ref.dtype)


def gcn_init(support, weights, bias, *, cheb_k, matmul_dtype=jnp.float32):
    """Pad / cast the invariant parameters ONCE (hoisted out of the hot path)."""
    f32 = jnp.float32
    N = support.shape[0]
    KC, O = weights.shape
    assert KC % cheb_k == 0
    C = KC // cheb_k

    Np = _round_up(N, 8)       # sublane alignment for the node dim
    Op = _round_up(O, 128)     # lane-dense output -> unmasked stores

    # 2*S (exact in bf16 as well: power-of-2 scale), zero-padded to (Np, Np).
    s2_p = (jnp.zeros((Np, Np), f32)
            .at[:N, :N].set(2.0 * support.astype(f32))
            .astype(matmul_dtype))
    # W kept at its true contraction size (cheb_k*C); only the output dim is
    # padded to 128 lanes.
    w_p = (jnp.zeros((KC, Op), f32)
           .at[:, :O].set(weights.astype(f32))
           .astype(matmul_dtype))
    # Bias stays f32 (epilogue add is f32 regardless of MXU dtype).
    b_p = jnp.zeros((1, Op), f32).at[0, :O].set(bias.astype(f32))

    return dict(s2=s2_p, w=w_p, b=b_p, cheb_k=cheb_k, C=C, O=O, N=N,
                Np=Np, Op=Op, mxu_dtype=matmul_dtype)


def gcn_forward(x, params):
    """x: (B, N, C) -> (B, N, O). Params from gcn_init()."""
    cheb_k = params["cheb_k"]
    C, O, N, Np, Op = params["C"], params["O"], params["N"], params["Np"], params["Op"]
    mxu_dtype = params["mxu_dtype"]

    B, N_in, C_in = x.shape
    assert N_in == N and C_in == C

    bt = _pick_bt(B)
    G = B // bt

    # Lay x out batch-along-lanes per tile: x_p[g, n, b*C + c] = x[g*bt+b, n, c]
    x_r = (x.astype(jnp.float32)
           .reshape(G, bt, N, C)
           .transpose(0, 2, 1, 3)
           .reshape(G, N, bt * C))
    x_p = (jnp.zeros((G, Np, bt * C), jnp.float32)
           .at[:, :N, :].set(x_r)
           .astype(mxu_dtype))

    kernel = functools.partial(_gcn_kernel, cheb_k=cheb_k, bt=bt, dim_in=C,
                               mxu_dtype=mxu_dtype)

    out_p = pl.pallas_call(
        kernel,
        out_shape=jax.ShapeDtypeStruct((G, bt * Np, Op), jnp.float32),
        grid_spec=pltpu.PrefetchScalarGridSpec(
            num_scalar_prefetch=0,
            grid=(G,),
            in_specs=[
                pl.BlockSpec((Np, Np), lambda g: (0, 0)),             # 2*support
                pl.BlockSpec((1, Np, bt * C), lambda g: (g, 0, 0)),   # x tile
                pl.BlockSpec((cheb_k * C, Op), lambda g: (0, 0)),     # weights
                pl.BlockSpec((1, Op), lambda g: (0, 0)),              # bias
            ],
            out_specs=pl.BlockSpec((1, bt * Np, Op), lambda g: (g, 0, 0)),
        ),
        compiler_params=pltpu.CompilerParams(
            dimension_semantics=("parallel",)),
    )(params["s2"], x_p, params["w"], params["b"])

    # Un-pad / un-tile: rows within a tile are batch-major (b outer, node inner).
    out = out_p.reshape(G, bt, Np, Op)[:, :, :N, :O].reshape(B, N, O)
    return out.astype(x.dtype)


def gcn_reference(x, support, weights, bias, *, cheb_k):
    """Pure-JAX reference mirroring the PyTorch forward exactly."""
    n = support.shape[0]
    support_set = [jnp.eye(n, dtype=support.dtype), support]
    for _ in range(2, cheb_k):
        support_set.append(2.0 * support @ support_set[-1] - support_set[-2])
    x_g = jnp.concatenate(
        [jnp.einsum('nm,bmc->bnc', s, x) for s in support_set[:cheb_k]], axis=-1)
    return jnp.einsum('bni,io->bno', x_g, weights) + bias


if __name__ == "__main__":
    # Small shapes consistent with the module's forward.
    B, N, DIM_IN, DIM_OUT, CHEB_K = 2, 16, 4, 32, 3

    key = jax.random.PRNGKey(0)
    kx, ks, kw, kb, kx2 = jax.random.split(key, 5)

    x = jax.random.normal(kx, (B, N, DIM_IN), dtype=jnp.float32)
    support = jax.random.normal(ks, (N, N), dtype=jnp.float32) * 0.1

    # Parameter init matching the module (xavier_normal_ weights, zero bias).
    fan_in, fan_out = CHEB_K * DIM_IN, DIM_OUT
    std = (2.0 / (fan_in + fan_out)) ** 0.5
    weights = jax.random.normal(kw, (fan_in, fan_out), dtype=jnp.float32) * std
    bias = jnp.zeros((DIM_OUT,), dtype=jnp.float32)

    # --- f32 MXU path, B=2 (grid of 2, bt=1) ---------------------------------
    params_f32 = gcn_init(support, weights, bias, cheb_k=CHEB_K)
    out = jax.block_until_ready(gcn_forward(x, params_f32))
    ref = gcn_reference(x, support, weights, bias, cheb_k=CHEB_K)
    assert out.shape == (B, N, DIM_OUT)
    assert jnp.allclose(out, ref, atol=1e-3, rtol=1e-3)

    # --- f32 path, larger batch (exercises lane-batched tiles, bt>1) + bias ---
    B2 = 8
    x2 = jax.random.normal(kx2, (B2, N, DIM_IN), dtype=jnp.float32)
    bias2 = jax.random.normal(kb, (DIM_OUT,), dtype=jnp.float32) * 0.1
    params2 = gcn_init(support, weights, bias2, cheb_k=CHEB_K)
    out2 = jax.block_until_ready(gcn_forward(x2, params2))
    ref2 = gcn_reference(x2, support, weights, bias2, cheb_k=CHEB_K)
    assert jnp.allclose(out2, ref2, atol=1e-3, rtol=1e-3)

    # --- bf16 MXU inputs + f32 accumulation (v5e/v6e/v7x fast path) ----------
    params_bf16 = gcn_init(support, weights, bias2, cheb_k=CHEB_K,
                           matmul_dtype=jnp.bfloat16)
    out_bf16 = jax.block_until_ready(gcn_forward(x2, params_bf16))
    assert jnp.allclose(out_bf16, ref2, atol=5e-2, rtol=5e-2)

    print("KERNEL_OK")
</pallas_src>

<mosaic_0001>
module attributes {stable_mosaic.version = 11 : i64} {
  func.func @_gcn_kernel(%arg0: i32, %arg1: memref<16x16xf32, #tpu.memory_space<vmem>>, %arg2: memref<1x16x4xf32, #tpu.memory_space<vmem>>, %arg3: memref<12x128xf32, #tpu.memory_space<vmem>>, %arg4: memref<1x128xf32, #tpu.memory_space<vmem>>, %arg5: memref<1x16x128xf32, #tpu.memory_space<vmem>>) attributes {dimension_semantics = [#tpu.dimension_semantics<parallel>], iteration_bounds = array<i64: 2>, scalar_prefetch = 0 : i64, scratch_operands = 0 : i64, tpu.core_type = #tpu.core_type<tc>, window_params = [{pipeline_mode = #tpu.pipeline_mode<synchronous>, transform_indices = @transform_0, window_bounds = array<i64: 16, 16>}, {transform_indices = @transform_1, window_bounds = array<i64: 1, 16, 4>}, {pipeline_mode = #tpu.pipeline_mode<synchronous>, transform_indices = @transform_2, window_bounds = array<i64: 12, 128>}, {pipeline_mode = #tpu.pipeline_mode<synchronous>, transform_indices = @transform_3, window_bounds = array<i64: 1, 128>}, {transform_indices = @transform_4, window_bounds = array<i64: 1, 16, 128>}]} {
    %c0 = arith.constant 0 : index
    %c0_0 = arith.constant 0 : index
    %0 = vector.load %arg1[%c0, %c0_0] : memref<16x16xf32, #tpu.memory_space<vmem>>, vector<16x16xf32>
    %c0_1 = arith.constant 0 : index
    %c0_2 = arith.constant 0 : index
    %1 = vector.load %arg3[%c0_1, %c0_2] : memref<12x128xf32, #tpu.memory_space<vmem>>, vector<12x128xf32>
    %c0_3 = arith.constant 0 : index
    %c0_4 = arith.constant 0 : index
    %2 = vector.load %arg4[%c0_3, %c0_4] : memref<1x128xf32, #tpu.memory_space<vmem>>, vector<1x128xf32>
    %c0_5 = arith.constant 0 : index
    %c0_6 = arith.constant 0 : index
    %c0_7 = arith.constant 0 : index
    %3 = vector.load %arg2[%c0_5, %c0_6, %c0_7] : memref<1x16x4xf32, #tpu.memory_space<vmem>>, vector<1x16x4xf32>
    %4 = vector.shape_cast %3 : vector<1x16x4xf32> to vector<16x4xf32>
    %c0_8 = arith.constant 0 : index
    %c0_9 = arith.constant 0 : index
    %c0_10 = arith.constant 0 : index
    %5 = vector.load %arg2[%c0_8, %c0_9, %c0_10] : memref<1x16x4xf32, #tpu.memory_space<vmem>>, vector<1x16x4xf32>
    %6 = vector.shape_cast %5 : vector<1x16x4xf32> to vector<16x4xf32>
    %cst = arith.constant dense<0.000000e+00> : vector<16x4xf32>
    %7 = tpu.matmul %0, %6, %cst {dimension_numbers = #tpu.dot_dimension_numbers<[1], [0], [0], [1], [0, 0, 1, 1], [], []>} : vector<16x16xf32>, vector<16x4xf32>, vector<16x4xf32> -> vector<16x4xf32>
    %cst_11 = arith.constant 5.000000e-01 : f32
    %8 = vector.broadcast %cst_11 : f32 to vector<16x4xf32>
    %9 = arith.mulf %8, %7 : vector<16x4xf32>
    %cst_12 = arith.constant dense<0.000000e+00> : vector<16x4xf32>
    %10 = tpu.matmul %0, %9, %cst_12 {dimension_numbers = #tpu.dot_dimension_numbers<[1], [0], [0], [1], [0, 0, 1, 1], [], []>} : vector<16x16xf32>, vector<16x4xf32>, vector<16x4xf32> -> vector<16x4xf32>
    %11 = arith.subf %10, %4 : vector<16x4xf32>
    %12 = tpu.concatenate %4, %9, %11 in 1 : vector<16x4xf32>, vector<16x4xf32>, vector<16x4xf32> -> vector<16x12xf32>
    %cst_13 = arith.constant dense<0.000000e+00> : vector<16x128xf32>
    %13 = tpu.matmul %12, %1, %cst_13 {dimension_numbers = #tpu.dot_dimension_numbers<[1], [0], [0], [1], [0, 0, 1, 1], [], []>} : vector<16x12xf32>, vector<12x128xf32>, vector<16x128xf32> -> vector<16x128xf32>
    %14 = vector.broadcast %2 : vector<1x128xf32> to vector<16x128xf32>
    %15 = arith.addf %13, %14 : vector<16x128xf32>
    %c0_14 = arith.constant 0 : index
    %c0_15 = arith.constant 0 : index
    %c0_16 = arith.constant 0 : index
    %16 = vector.load %arg5[%c0_14, %c0_15, %c0_16] : memref<1x16x128xf32, #tpu.memory_space<vmem>>, vector<1x16x128xf32>
    %17 = vector.shape_cast %16 : vector<1x16x128xf32> to vector<16x128xf32>
    %18 = vector.shape_cast %15 : vector<16x128xf32> to vector<1x16x128xf32>
    tpu.vector_store %arg5[%c0_14, %c0_15, %c0_16], %18 {strides = array<i32>} : memref<1x16x128xf32, #tpu.memory_space<vmem>>, vector<1x16x128xf32>,
    return
  }
  func.func @transform_0(%arg0: i32) -> (i32, i32) {
    %c0_i32 = arith.constant 0 : i32
    %c0_i32_0 = arith.constant 0 : i32
    %c0_i32_1 = arith.constant 0 : i32
    return %c0_i32, %c0_i32_0 : i32, i32
  }
  func.func @transform_1(%arg0: i32) -> (i32, i32, i32) {
    %c0_i32 = arith.constant 0 : i32
    %c0_i32_0 = arith.constant 0 : i32
    %c0_i32_1 = arith.constant 0 : i32
    return %arg0, %c0_i32, %c0_i32_0 : i32, i32, i32
  }
  func.func @transform_2(%arg0: i32) -> (i32, i32) {
    %c0_i32 = arith.constant 0 : i32
    %c0_i32_0 = arith.constant 0 : i32
    %c0_i32_1 = arith.constant 0 : i32
    return %c0_i32, %c0_i32_0 : i32, i32
  }
  func.func @transform_3(%arg0: i32) -> (i32, i32) {
    %c0_i32 = arith.constant 0 : i32
    %c0_i32_0 = arith.constant 0 : i32
    %c0_i32_1 = arith.constant 0 : i32
    return %c0_i32, %c0_i32_0 : i32, i32
  }
  func.func @transform_4(%arg0: i32) -> (i32, i32, i32) {
    %c0_i32 = arith.constant 0 : i32
    %c0_i32_0 = arith.constant 0 : i32
    %c0_i32_1 = arith.constant 0 : i32
    return %arg0, %c0_i32, %c0_i32_0 : i32, i32, i32
  }
}

</mosaic_0001>

<bundles_post_ra>
// kernel: tpu_custom_call.1
= control target key start
LH: loop header
LB: loop body
LE: loop exit
PB: predicated region body
PF: predicated region fallthrough
CT: control target
= control target key end

     0   :  { %9 = vsyncpa [#allocation3], 0  ;;  %s868_s0 = inlined_call_operand.vmem [shape: f32[16,16], index: 0, kind: input, shape index: {}]   ;;  %s869_s1 = inlined_call_operand.vmem [shape: f32[2,16,4], index: 1, kind: input, shape index: {}]   ;;  %s870_s2 = inlined_call_operand.vmem [shape: f32[12,128], index: 2, kind: input, shape index: {}]   ;;  %s871_s3 = inlined_call_operand.vmem [shape: f32[1,128], index: 3, kind: input, shape index: {}]   ;;  %s872_s4 = inlined_call_operand.hbm [shape: f32[2,16,128], index: 4, kind: output, shape index: {}]  }
   0x1   :  { %11 = vsyncpa [#allocation3 + $0x1], 0  ;;  %s744_s15 = smov 0   ;;  %s746_s16 = smov 0  }
   0x2   :  { %s748_s17 = smov 0   ;;  %s750_s18 = smov 0  }
   0x3 LB: > { %s765_s19 = sadd.s32 4294967295, %s713_s18   ;;  %s556_s20 = sadd.s32 4294967294, %s713_s18   ;;  %s713_s18 = sphi %s750_s18, %s878_s18   ;;  %s709_s17 = sphi %s748_s17, %s877_s17   ;;  %s705_s16 = sphi %s746_s16, %s876_s16   ;;  %s701_s15 = sphi %s744_s15, %s875_s15  }
   0x4   : > { %s769_s21 = sadd.s32 1, %s713_s18   ;;  %s113_s22 = sadd.s32 1, %s709_s17 }
   0x5   : > { %s110_s23 = ssub.s32 %s713_s18, %s769_s21  ;;  %p123_p0 = scmp.ne.s32.totalorder %s709_s17, %s705_s16 }
   0x6   : > { %p111_p1 = scmp.eq.s32.totalorder %s110_s23, 0  ;;  %p124_p2 = scmp.eq.s32.totalorder %s765_s19, 1 }
   0x7   : > { %p129_p3 = scmp.ne.s32.totalorder %s705_s16, %s701_s15  ;;  %p130_p4 = scmp.eq.s32.totalorder %s556_s20, 1 }
   0x8   : > { %s780_s24 = scalar_select %p111_p1, %s709_s17, %s113_s22  }
   0x9   : > { %p782_p5 = por %p124_p2, %p123_p0  ;;  %p786_p6 = por %p130_p4, %p129_p3 }
   0xa   : > { %p559_p7 = scmp.ge.s32.totalorder %s713_s18, 1  ;;  %p165_p8 = scmp.lt.s32.totalorder %s713_s18, 3 }
   0xc   : > { %p166_p9 = pnand %p559_p7, %p165_p8 }
   0xd   : > { %p191_p10 = scmp.lt.s32.totalorder (!%p166_p9), %s765_s19, 1  ;;  %s715_s10 = smov (!%p166_p9), 4  }
   0xe   : > { %169 = sbr.rel (%p166_p9) target bundleno = 755 (0x2f3), region = 36  ;;  %s716_s20 = smov (!%p166_p9), 8  }
   0xf   : > { %s188_s22 = sand.u32 (!%p166_p9), 1, %s705_s16   ;;  %s577_s5 = sshll.u32 (!%p166_p9), %s765_s19, 8 }
  0x10   : > { %s560_s23 = sshll.u32 (!%p166_p9), %s188_s22, 4  ;;  %s825_s8 = scalar_lea.hbm (!%p166_p9), %s872_s4, %s577_s5 }
  0x11   : > { %s827_s9 = scalar_lea.sflag (!%p166_p9), [#allocation3], %s188_s22 }
  0x13   : > { %v196_v0 = vld [vmem:[%s868_s0] sm:$0xff]  ;;  %vm203_vm0 = vcmask 130048   ;;  %s192_s29 = scalar_select %p191_p10, %s765_s19, 1  ;;  %v197_v3 = vld [vmem:[%s868_s0 + $0x8] sm:$0xff]  ;;  %vm399_vm1 = vcmask 1043456   ;;  %vm380_vm2 = vcmask 31744  }
  0x14   : > { %594 = vmatprep.mubr.msk.f32.mxu0 %vm203_vm0, %v196_v0  ;;  %601 = vmatprep.mubr.msk.f32.mxu1 %vm203_vm0, %v196_v0  ;;  %v199_v8 = vld [vmem:[%s870_s2 + $0x8] sm:$0xf]  ;;  %v198_v9 = vld [vmem:[%s870_s2] sm:$0xff]  ;;  %vm383_vm3 = vcmask 64512   ;;  %vm392_vm4 = vcmask 97280   ;;  %s717_s19 = smov [#allocation2]  }
  0x15   : > { %s576_s30 = sshll.u32 %s192_s29, 4  ;;  %v567_v22 = vld [vmem:[%s871_s3] ss:$0 sm:$0xff]  ;;  %s190_s29 = scalar_lea.vmem [#allocation2], %s560_s23 }
  0x16   : > { %s195_s7 = scalar_lea.vmem %s869_s1, %s576_s30  ;;  %s494_s30 = sshll.u32 %s190_s29, 4  ;;  %s820_s30 = int_to_ptr.vmem [resolvable:$true] %s494_s30 }
  0x17   : > { %v202_v1 = vld [vmem:[%s195_s7 + $0x8] sm:$0xff]  ;;  %v201_v2 = vld [vmem:[%s195_s7] sm:$0xff]  ;;  %s657_s11 = sshll.u32 %s717_s19, 4  ;;  %s658_s11 = int_to_ptr.vmem [resolvable:$false] %s657_s11 }
  0x18   : > { %590 = vmatprep.subr.mxu0 %v202_v1  ;;  %s659_s12 = scalar_lea.vmem %s658_s11, 512  ;;  %p660_p0 = scmp.lt.s32.totalorder %s820_s30, %s658_s11 }
  0x19   : > { %591 = vmatpush3.msra.mxu0 %v202_v1 }
  0x1a   : > { %592 = vmatprep.subr.mxu0 %v201_v2 }
  0x1b   : > { %593 = vmatpush3.msra.mxu0 %v201_v2 }
  0x1c   : > { %595 = vmatmul.mubr.msk.f32.vlgmr.msra.gmra.mxu0 %vm203_vm0, %v197_v3  ;;  %604 = vmatprep.subr.msk.mxu0 %vm399_vm1, %v199_v8 }
  0x1d   : > { %605 = vmatpush3.msk.msra.mxu0 %vm399_vm1, %v199_v8 }
  0x1e   : > { %606 = vmatprep.subr.mxu0 %v198_v9 }
  0x1f   : > { %607 = vmatpush3.msra.mxu0 %v198_v9 }
  0xdc   : > { %v596_v4 = vpop.f32.mrf.mxu0 }
  0xdd   : > { %v286_v5 = vmul.f32 0.5, %v596_v4 }
  0xde   : > { %v276_v6 = vpop.f32.mrf.mxu0 }
  0xdf   : > { %v285_v7 = vmul.f32 0.5, %v276_v6  ;;  %597 = vmatprep.subr.mxu1 %v286_v5 }
  0xe0   : > { %598 = vmatpush3.msra.mxu1 %v286_v5 }
  0xe1   : > { %366 = vrot.lane.b32.xlu0 %v285_v7, %s715_s10  ;;  %599 = vmatprep.subr.mxu1 %v285_v7 }
  0xe2   : > { %600 = vmatpush3.msra.mxu1 %v285_v7 }
  0xe3   : > { %602 = vmatmul.mubr.msk.f32.vlgmr.msra.gmra.mxu1 %vm203_vm0, %v197_v3 }
  0xe5   : > { %368 = vrot.lane.b32.xlu0 %v286_v5, %s715_s10  ;;  %s653_s10 = scalar_lea.vmem %s820_s30, 256 }
  0xe6   : > { %p654_p11 = scmp.ne.s32.totalorder %s820_s30, %s653_s10  ;;  %p661_p1 = scmp.lt.s32.totalorder %s659_s12, %s653_s10 }
  0xe8   : > { %p655_p12 = pnand %p654_p11, %p782_p5  ;;  %p662_p2 = por %p661_p1, %p660_p0 }
  0xea   : > { %p656_p13 = pneg %p655_p12 }
  0xec   : > { %p663_p3 = pnand %p662_p2, %p656_p13 }
 0x153   : > { %v367_v14 = vpop.permute.xlu0 %366 }
 0x154   : > { %v381_v15 = vsel %vm380_vm2, %v201_v2, %v367_v14 }
 0x157   : > { %v369_v17 = vpop.permute.xlu0 %368 }
 0x158   : > { %v382_v19 = vsel %vm380_vm2, %v202_v1, %v369_v17 }
 0x1a3   : > { %v603_v10 = vpop.f32.mrf.mxu1 }
 0x1a4   : > { %v363_v13 = vsub.f32 %v603_v10, %v202_v1 }
 0x1a5   : > { %v353_v11 = vpop.f32.mrf.mxu1 }
 0x1a6   : > { %v362_v12 = vsub.f32 %v353_v11, %v201_v2 }
 0x1a8   : > { %374 = vrot.lane.b32.xlu1 %v362_v12, %s716_s20 }
 0x1ac   : > { %376 = vrot.lane.b32.xlu1 %v363_v13, %s716_s20 }
 0x21a   : > { %v375_v16 = vpop.permute.xlu1 %374 }
 0x21b   : > { %v384_v18 = vsel %vm383_vm3, %v381_v15, %v375_v16 }
 0x21c   : > { %608 = vmatprep.mubr.msk.f32.mxu0 %vm392_vm4, %v384_v18 }
 0x21e   : > { %v377_v20 = vpop.permute.xlu1 %376 }
 0x21f   : > { %v385_v21 = vsel %vm383_vm3, %v382_v19, %v377_v20 }
 0x220   : > { %609 = vmatmul.mubr.msk.f32.vlgmr.msra.gmra.mxu0 %vm392_vm4, %v385_v21 }
 0x2e0   : > { %v610_v23 = vpop.f32.mrf.mxu0 }
 0x2e1   : > { %v475_v24 = vadd.f32 %v610_v23, %v567_v22 }
 0x2e2   : > { %v469_v25 = vpop.f32.mrf.mxu0 }
 0x2e3   : > { %479 = vst [vmem:[%s190_s29 + $0x8] sm:$0xff] %v475_v24  ;;  %v470_v26 = vadd.f32 %v567_v22, %v469_v25 }
 0x2e5   : > { %478 = vst [vmem:[%s190_s29] sm:$0xff] %v470_v26 }
 0x2e6   : > { %666 = shalt.err (!%p663_p3)
}
 0x2e7   : > { %s667_s13 = scalar_lea.hbm %s825_s8, 256  ;;  %s671_s23 = scalar_lea.hbm %s872_s4, 512 }
 0x2e8   : > { %p668_p4 = scmp.ne.s32.totalorder %s825_s8, %s667_s13  ;;  %p672_p9 = scmp.lt.s32.totalorder %s825_s8, %s872_s4 }
 0x2e9   : > { %p673_p10 = scmp.lt.s32.totalorder %s671_s23, %s667_s13 }
 0x2ea   : > { %p669_p7 = pnand %p668_p4, %p782_p5 }
 0x2eb   : > { %p674_p11 = por %p673_p10, %p672_p9 }
 0x2ec   : > { %p670_p8 = pneg %p669_p7 }
 0x2ee   : > { %p675_p12 = pnand %p674_p11, %p670_p8 }
 0x2f0   : > { %678 = shalt.err (!%p675_p12)
}
 0x2f1   : > { %s718_s29 = smov 128  }
 0x2f2   : > { %611 = dma.vmem_to_hbm [thread:$0]  (%p782_p5), %s820_s30, 256, %s825_s8, %s827_s9, %s718_s29, %s718_s29, %s716_s20  }
 0x2f3 PF: > { %p617_p13 = scmp.ge.s32.totalorder %s713_s18, 2  ;;  %s509_s5 = sand.u32 1, %s701_s15  }
 0x2f4   : > { %s510_s6 = scalar_lea.sflag [#allocation3], %s509_s5 }
 0x2f5   : > { %p614_p0 = pnand %p617_p13, %p786_p6 }
 0x2f7   : > { %p615_p1 = pneg %p614_p0 }
 0x2f9   : > { %696 = dma.done.wait (%p615_p1), %s510_s6, 256  }
 0x2fa   : > { %698 = vsyncadd (%p615_p1), %s510_s6, 4294967040  ;;  %p14_p2 = scmp.ge.s32.totalorder %s769_s21, 4   ;;  %s875_s15 = smov %s705_s16 }
 0x2fb   : > { %s876_s16 = smov %s709_s17  ;;  %s877_s17 = smov %s780_s24 }
 0x2fc   : > { %s878_s18 = smov %s769_s21  ;;  %16 = sbr.rel (!%p14_p2) target bundleno = 3 (0x3), region = 71 }
 0x301   :  { %515 = vsyncpa [#allocation3], 1 }
 0x302   :  { %517 = vsyncpa [#allocation3 + $0x1], 1 }

</bundles_post_ra>
